<compile_context>
chip_gen: v6e
topology: v6e:2x2x1
jax: 0.10.0
libtpu: 0.0.40
codegen_flags: <defaults>
</compile_context>

<pallas_src>
import functools

import jax
import jax.numpy as jnp
from jax.experimental import pallas as pl
from jax.experimental.pallas import tpu as pltpu


def _round_up(n, m):
    return ((n + m - 1) // m) * m


def _linear_kernel(x_ref, w_ref, b_ref, o_ref):
    # x_ref: (tb, D)  w_ref: (D, C)  b_ref: (1, C)  o_ref: (tb, C)
    acc = jnp.dot(x_ref[...], w_ref[...], preferred_element_type=jnp.float32)
    o_ref[...] = (acc + b_ref[...].astype(jnp.float32)).astype(o_ref.dtype)


def init_params(key, input_size, num_classes):
    # torch.nn.init.xavier_normal_: std = sqrt(2 / (fan_in + fan_out))
    std = (2.0 / (input_size + num_classes)) ** 0.5
    weight = std * jax.random.normal(key, (num_classes, input_size), jnp.float32)
    bias = jnp.full((num_classes,), -5.0, dtype=jnp.float32)
    return weight, bias


def prepare_params(weight, bias, compute_dtype=jnp.float32):
    """One-time layout prep, kept out of the hot path.

    weight: (C, D) PyTorch layout -> contiguous (D, C), pre-cast.
    bias:   (C,)                  -> (1, C), pre-cast.
    No padding: the class/feature dims stay at their true extents.
    """
    w_t = jnp.asarray(weight.T, dtype=compute_dtype)          # (D, C)
    b2d = jnp.asarray(bias, dtype=compute_dtype).reshape(1, -1)  # (1, C)
    return w_t, b2d


def _choose_batch_tile(B, D, C, itemsize,
                       vmem_budget=32 * 1024 * 1024, cap=4096):
    """Batch tile size.

    Small B: one tile == B (block == full array dim; single invocation).
    Large B: largest multiple-of-8 tile <= cap that fits a v7x-safe VMEM
    budget (double-buffered x and out tiles + resident W/b), capped at
    ceil(B/2) so the parallel batch axis always has >= 2 tiles for v7x's
    two TensorCores.
    """
    if B <= 512:
        return B
    resident = (D * C + C) * itemsize
    tb = cap
    while tb > 8 and 2 * tb * (D + C) * itemsize + resident > vmem_budget:
        tb //= 2
    half = _round_up(pl.cdiv(B, 2), 8)
    tb = max(min(tb, half), 8)
    return tb


@functools.partial(jax.jit, static_argnames=())
def logistic_regression_forward(x, w_t, b2d):
    """x: (B, D); w_t: (D, C) from prepare_params; b2d: (1, C)."""
    B, D = x.shape
    D_w, C = w_t.shape
    assert D_w == D
    out_dtype = x.dtype
    itemsize = jnp.dtype(x.dtype).itemsize

    tb = _choose_batch_tile(B, D, C, itemsize)
    grid = (pl.cdiv(B, tb),)

    out = pl.pallas_call(
        _linear_kernel,
        out_shape=jax.ShapeDtypeStruct((B, C), out_dtype),
        grid_spec=pltpu.PrefetchScalarGridSpec(
            num_scalar_prefetch=0,
            grid=grid,
            in_specs=[
                pl.BlockSpec((tb, D), lambda i: (i, 0)),   # streamed x
                pl.BlockSpec((D, C), lambda i: (0, 0)),    # resident W (D, C)
                pl.BlockSpec((1, C), lambda i: (0, 0)),    # resident bias
            ],
            out_specs=pl.BlockSpec((tb, C), lambda i: (i, 0)),
        ),
        compiler_params=pltpu.CompilerParams(
            # Shard batch tiles across v7x's 2 TensorCores; no-op on v5e/v6e.
            dimension_semantics=("parallel",),
        ),
        cost_estimate=pl.CostEstimate(
            flops=2 * B * D * C,
            transcendentals=0,
            bytes_accessed=(B * D + D * C + C) * itemsize
                           + B * C * jnp.dtype(out_dtype).itemsize,
        ),
    )(x, w_t, b2d)

    return out


if __name__ == "__main__":
    input_size = 32
    num_classes = 16
    batch = 8

    key = jax.random.PRNGKey(0)
    k_x, k_w = jax.random.split(key)
    x = jax.random.normal(k_x, (batch, input_size), jnp.float32)
    weight, bias = init_params(k_w, input_size, num_classes)

    # One-time layout prep (transpose only, no padding), outside the hot path.
    w_t, b2d = prepare_params(weight, bias)

    out = logistic_regression_forward(x, w_t, b2d)
    jax.block_until_ready(out)

    # Reference check against plain JAX.
    ref = x @ weight.T + bias
    assert out.shape == (batch, num_classes)
    assert jnp.allclose(out, ref, atol=1e-5, rtol=1e-5)

    print("KERNEL_OK")
</pallas_src>

<mosaic_0001>
module attributes {stable_mosaic.version = 11 : i64} {
  func.func @_linear_kernel(%arg0: i32, %arg1: memref<8x32xf32, #tpu.memory_space<vmem>>, %arg2: memref<32x16xf32, #tpu.memory_space<vmem>>, %arg3: memref<1x16xf32, #tpu.memory_space<vmem>>, %arg4: memref<8x16xf32, #tpu.memory_space<vmem>>) attributes {dimension_semantics = [#tpu.dimension_semantics<parallel>], iteration_bounds = array<i64: 1>, scalar_prefetch = 0 : i64, scratch_operands = 0 : i64, tpu.core_type = #tpu.core_type<tc>, window_params = [{transform_indices = @transform_0, window_bounds = array<i64: 8, 32>}, {pipeline_mode = #tpu.pipeline_mode<synchronous>, transform_indices = @transform_1, window_bounds = array<i64: 32, 16>}, {pipeline_mode = #tpu.pipeline_mode<synchronous>, transform_indices = @transform_2, window_bounds = array<i64: 1, 16>}, {transform_indices = @transform_3, window_bounds = array<i64: 8, 16>}]} {
    %c0 = arith.constant 0 : index
    %c0_0 = arith.constant 0 : index
    %0 = vector.load %arg1[%c0, %c0_0] : memref<8x32xf32, #tpu.memory_space<vmem>>, vector<8x32xf32>
    %c0_1 = arith.constant 0 : index
    %c0_2 = arith.constant 0 : index
    %1 = vector.load %arg2[%c0_1, %c0_2] : memref<32x16xf32, #tpu.memory_space<vmem>>, vector<32x16xf32>
    %cst = arith.constant dense<0.000000e+00> : vector<8x16xf32>
    %2 = tpu.matmul %0, %1, %cst {dimension_numbers = #tpu.dot_dimension_numbers<[1], [0], [0], [1], [0, 0, 1, 1], [], []>} : vector<8x32xf32>, vector<32x16xf32>, vector<8x16xf32> -> vector<8x16xf32>
    %c0_3 = arith.constant 0 : index
    %c0_4 = arith.constant 0 : index
    %3 = vector.load %arg3[%c0_3, %c0_4] : memref<1x16xf32, #tpu.memory_space<vmem>>, vector<1x16xf32>
    %4 = vector.broadcast %3 : vector<1x16xf32> to vector<8x16xf32>
    %5 = arith.addf %2, %4 : vector<8x16xf32>
    %c0_5 = arith.constant 0 : index
    %c0_6 = arith.constant 0 : index
    %6 = vector.load %arg4[%c0_5, %c0_6] : memref<8x16xf32, #tpu.memory_space<vmem>>, vector<8x16xf32>
    tpu.vector_store %arg4[%c0_5, %c0_6], %5 {strides = array<i32>} : memref<8x16xf32, #tpu.memory_space<vmem>>, vector<8x16xf32>,
    return
  }
  func.func @transform_0(%arg0: i32) -> (i32, i32) {
    %c0_i32 = arith.constant 0 : i32
    %c0_i32_0 = arith.constant 0 : i32
    return %arg0, %c0_i32 : i32, i32
  }
  func.func @transform_1(%arg0: i32) -> (i32, i32) {
    %c0_i32 = arith.constant 0 : i32
    %c0_i32_0 = arith.constant 0 : i32
    %c0_i32_1 = arith.constant 0 : i32
    return %c0_i32, %c0_i32_0 : i32, i32
  }
  func.func @transform_2(%arg0: i32) -> (i32, i32) {
    %c0_i32 = arith.constant 0 : i32
    %c0_i32_0 = arith.constant 0 : i32
    %c0_i32_1 = arith.constant 0 : i32
    return %c0_i32, %c0_i32_0 : i32, i32
  }
  func.func @transform_3(%arg0: i32) -> (i32, i32) {
    %c0_i32 = arith.constant 0 : i32
    %c0_i32_0 = arith.constant 0 : i32
    return %arg0, %c0_i32 : i32, i32
  }
}

</mosaic_0001>

<bundles_post_ra>
// kernel: logistic_regression_forward.1
= control target key start
LH: loop header
LB: loop body
LE: loop exit
PB: predicated region body
PF: predicated region fallthrough
CT: control target
= control target key end

     0   :  { %v160_v1 = vmov 0.0   ;;  %vm161_vm0 = vmmov 0   ;;  %s204_s0 = inlined_call_operand.vmem [shape: f32[8,32], index: 0, kind: input, shape index: {}]   ;;  %s205_s1 = inlined_call_operand.vmem [shape: f32[32,16], index: 1, kind: input, shape index: {}]   ;;  %s206_s2 = inlined_call_operand.vmem [shape: f32[1,16], index: 2, kind: input, shape index: {}]   ;;  %s207_s3 = inlined_call_operand.hbm [shape: f32[8,16], index: 3, kind: output, shape index: {}]  }
   0x1   :  { %v19_v0 = vld [vmem:[%s205_s1 + $0x18] sm:$0xff]  ;;  %124 = vmatprep.subr.mxu0 %v160_v1  ;;  %v18_v2 = vld [vmem:[%s205_s1 + $0x10] sm:$0xff]  ;;  %132 = vmatprep.mubr.msk.f32.mxu0 %vm161_vm0, %v160_v1 }
   0x2   :  { %125 = vmatpush3.msra.mxu0 %v19_v0 }
   0x3   :  { %8 = vsyncpa [#allocation3], 0  ;;  %126 = vmatprep.subr.mxu0 %v160_v1  ;;  %v17_v3 = vld [vmem:[%s205_s1 + $0x8] sm:$0xff]  ;;  %v16_v4 = vld [vmem:[%s205_s1] sm:$0xff]  ;;  %vm27_vm1 = vcmask 261120   ;;  %s162_s24 = smov [#allocation2]  }
   0x4   :  { %127 = vmatpush3.msra.mxu0 %v18_v2  ;;  %v15_v5 = vld [vmem:[%s204_s0] sm:$0xff]  ;;  %s109_s25 = sshll.u32 %s162_s24, 4  ;;  %vm101_vm2 = vcmask 130048   ;;  %s110_s25 = int_to_ptr.vmem [resolvable:$true] %s109_s25 }
   0x5   :  { %128 = vmatprep.subr.mxu0 %v160_v1  ;;  %v117_v6 = vld [vmem:[%s206_s2] ss:$0 sm:$0xff]  ;;  %s138_s1 = scalar_lea.vmem %s110_s25, 128  ;;  %p143_p1 = scmp.lt.s32.totalorder %s110_s25, %s110_s25 }
   0x6   :  { %129 = vmatpush3.msra.mxu0 %v17_v3  ;;  %p139_p0 = scmp.ne.s32.totalorder %s110_s25, %s138_s1  ;;  %p144_p2 = scmp.lt.s32.totalorder %s138_s1, %s138_s1 }
   0x7   :  { %130 = vmatprep.subr.mxu0 %v160_v1 }
   0x8   :  { %131 = vmatpush3.msra.mxu0 %v16_v4  ;;  %p145_p3 = por %p144_p2, %p143_p1 }
   0x9   :  { %133 = vmatmul.mubr.msk.f32.vlgmr.msra.gmra.mxu0 %vm27_vm1, %v15_v5 }
   0xa   :  { %p146_p4 = pnand %p145_p3, %p139_p0 }
  0xc9   :  { %v97_v7 = vpop.f32.mrf.mxu0 }
  0xca   :  { %v98_v8 = vadd.f32 %v117_v6, %v97_v7 }
  0xcb   :  { %v134_v9 = vpop.f32.mrf.mxu0 }
  0xcc   :  { %102 = vst.msk [vmem:[#allocation2] sm:$0xff] %vm101_vm2, %v98_v8 }
  0xcd   :  { %149 = shalt.err (!%p146_p4)
}
  0xce   :  { %112 = dma.vmem_to_hbm [thread:$0]  %s110_s25, 128, %s207_s3, [#allocation3]  }
  0xcf   :  { %158 = dma.done.wait [#allocation3], 128  }
  0xd0   :  { %159 = vsyncadd [#allocation3], 4294967168 }
  0xd1   :  { %116 = vsyncpa [#allocation3], 1 }

</bundles_post_ra>
